<compile_context>
chip_gen: v7x
topology: tpu7x:2x2x1
jax: 0.10.0
libtpu: 0.0.40
codegen_flags: <defaults>
</compile_context>

<pallas_src>
import jax
import jax.numpy as jnp
from jax.experimental import pallas as pl
from jax.experimental.pallas import tpu as pltpu


def _linreg_kernel(w_ref, b_ref, x_ref, o_ref):
    # w_ref, b_ref: SMEM refs of shape (1,)
    # x_ref, o_ref: VMEM refs holding one [TM, D] row tile
    w = w_ref[0]
    b = b_ref[0]
    o_ref[...] = (w * x_ref[...] + b).astype(o_ref.dtype)


def _choose_tm(n: int, d: int, itemsize: int,
               target_tile_bytes: int = 4 << 20,
               budget_bytes: int = 24 << 20,
               min_blocks: int = 4,
               min_split_bytes: int = 2 << 20) -> int:
    """Pick a row-tile size TM (multiple of 8, or the full N).

    * Bytes-based: aim for ~target_tile_bytes per tile, bounded so the
      double-buffered in+out working set (4 * TM * D * itemsize) stays under
      budget_bytes.
    * If the whole array is bigger than min_split_bytes, cap TM so the grid
      has at least min_blocks blocks (pipelining + v7x megacore sharding).
    """
    row_bytes = d * itemsize
    tm = max(1, target_tile_bytes // row_bytes)
    tm = min(tm, max(1, budget_bytes // (4 * row_bytes)))
    tm = max(8, (tm // 8) * 8)

    total_bytes = n * row_bytes
    if total_bytes > min_split_bytes and n >= min_blocks * 8:
        cap = max(8, ((n // min_blocks) // 8) * 8)
        tm = min(tm, cap)

    if tm >= n:
        return n  # block equals the full array dim -> always a legal shape
    return tm


def _run_2d(x2d: jax.Array, weights: jax.Array, bias: jax.Array,
            tm: int | None) -> jax.Array:
    n, d = x2d.shape
    itemsize = x2d.dtype.itemsize

    if tm is None:
        tm = _choose_tm(n, d, itemsize)
    else:
        tm = int(tm)
        if tm < n:
            # Respect the (8,128) block rule for user-supplied tile sizes.
            tm = max(8, (tm // 8) * 8)
        tm = min(tm, n)

    grid = (pl.cdiv(n, tm),)
    return pl.pallas_call(
        _linreg_kernel,
        out_shape=jax.ShapeDtypeStruct((n, d), x2d.dtype),
        grid_spec=pltpu.PrefetchScalarGridSpec(
            num_scalar_prefetch=0,
            grid=grid,
            in_specs=[
                pl.BlockSpec(memory_space=pltpu.SMEM),    # weights (1,)
                pl.BlockSpec(memory_space=pltpu.SMEM),    # bias    (1,)
                pl.BlockSpec((tm, d), lambda i: (i, 0)),  # x tile, lane-dense full D
            ],
            out_specs=pl.BlockSpec((tm, d), lambda i: (i, 0)),
        ),
        compiler_params=pltpu.CompilerParams(
            # Independent row-blocks: genuinely parallel -> megacore sharding on v7x.
            dimension_semantics=("parallel",),
            # Explicit limit so larger byte-sized tiles are safe on v5e's
            # 16 MiB scoped default and within v7x's 64 MiB-per-TC physical VMEM.
            vmem_limit_bytes=32 << 20,
        ),
    )(weights, bias, x2d)


def linear_regression_forward(x: jax.Array, weights: jax.Array, bias: jax.Array,
                              tm: int | None = None, lanes: int = 512) -> jax.Array:
    """y = weights * x + bias, scalar (1,) weights/bias broadcast elementwise.

    Accepts any input shape.  If the last dim is already a (>=128) multiple of
    128 the array is processed in its native layout; otherwise it is flattened
    to a padded lane-dense (rows, `lanes`) view and reshaped back.
    """
    assert weights.shape == (1,) and bias.shape == (1,)
    orig_shape = x.shape
    n_elems = x.size
    if n_elems == 0:
        return jnp.zeros(orig_shape, x.dtype)

    lane_dense = x.ndim >= 2 and x.shape[-1] >= 128 and (x.shape[-1] % 128 == 0)

    if lane_dense:
        x2d = x.reshape(-1, x.shape[-1])
        y2d = _run_2d(x2d, weights, bias, tm)
        return y2d.reshape(orig_shape)

    # Flatten + pad to a lane-dense slab: rows a multiple of 8, width `lanes`
    # (a large multiple of 128) -> unmasked vector stores, contiguous DMAs.
    chunk = 8 * lanes
    rows = pl.cdiv(n_elems, chunk) * 8
    padded = rows * lanes
    flat = x.reshape(-1)
    if padded != n_elems:
        flat = jnp.pad(flat, (0, padded - n_elems))
    x2d = flat.reshape(rows, lanes)
    y2d = _run_2d(x2d, weights, bias, tm)
    return y2d.reshape(-1)[:n_elems].reshape(orig_shape)


if __name__ == "__main__":
    key = jax.random.PRNGKey(0)
    kx, kw, kb, k2, k3 = jax.random.split(key, 5)

    weights = jax.random.normal(kw, (1,), dtype=jnp.float32)
    bias = jax.random.normal(kb, (1,), dtype=jnp.float32)

    # 1) Lane-dense native layout [256, 128] f32, auto-sized tile.
    x = jax.random.normal(kx, (256, 128), dtype=jnp.float32)
    y_ref = weights * x + bias
    y = jax.block_until_ready(linear_regression_forward(x, weights, bias))
    assert y.shape == y_ref.shape and y.dtype == y_ref.dtype
    assert jnp.allclose(y, y_ref, atol=1e-6, rtol=1e-6)

    # 2) Forced multi-block tiling (exercises the pipelined row-tiled path and
    #    the user-tm rounding).
    y_tiled = jax.block_until_ready(linear_regression_forward(x, weights, bias, tm=60))
    assert jnp.allclose(y_tiled, y_ref, atol=1e-6, rtol=1e-6)

    # 3) Classic linear-regression shape [100, 1] -> flatten + pad lane-dense path.
    x_col = jax.random.normal(k2, (100, 1), dtype=jnp.float32)
    y_col_ref = weights * x_col + bias
    y_col = jax.block_until_ready(linear_regression_forward(x_col, weights, bias))
    assert y_col.shape == y_col_ref.shape
    assert jnp.allclose(y_col, y_col_ref, atol=1e-6, rtol=1e-6)

    # 4) Arbitrary odd 3-D shape -> flatten path, reshape back.
    x_odd = jax.random.normal(k3, (4, 7, 33), dtype=jnp.float32)
    y_odd_ref = weights * x_odd + bias
    y_odd = jax.block_until_ready(linear_regression_forward(x_odd, weights, bias))
    assert y_odd.shape == y_odd_ref.shape
    assert jnp.allclose(y_odd, y_odd_ref, atol=1e-6, rtol=1e-6)

    print("KERNEL_OK")
</pallas_src>

<mosaic_0001>
module attributes {stable_mosaic.version = 11 : i64} {
  func.func @_linreg_kernel(%arg0: i32, %arg1: memref<1xf32, #tpu.memory_space<smem>>, %arg2: memref<1xf32, #tpu.memory_space<smem>>, %arg3: memref<256x128xf32, #tpu.memory_space<vmem>>, %arg4: memref<256x128xf32, #tpu.memory_space<vmem>>) attributes {dimension_semantics = [#tpu.dimension_semantics<parallel>], iteration_bounds = array<i64: 1>, scalar_prefetch = 0 : i64, scratch_operands = 0 : i64, tpu.core_type = #tpu.core_type<tc>, window_params = [{transform_indices = @transform_0, window_bounds = array<i64: 1>}, {transform_indices = @transform_1, window_bounds = array<i64: 1>}, {transform_indices = @transform_2, window_bounds = array<i64: 256, 128>}, {transform_indices = @transform_3, window_bounds = array<i64: 256, 128>}]} {
    %c0 = arith.constant 0 : index
    %0 = memref.load %arg1[%c0] : memref<1xf32, #tpu.memory_space<smem>>
    %c0_0 = arith.constant 0 : index
    %1 = memref.load %arg2[%c0_0] : memref<1xf32, #tpu.memory_space<smem>>
    %c0_1 = arith.constant 0 : index
    %c0_2 = arith.constant 0 : index
    %2 = vector.load %arg3[%c0_1, %c0_2] : memref<256x128xf32, #tpu.memory_space<vmem>>, vector<256x128xf32>
    %3 = vector.broadcast %0 : f32 to vector<256x128xf32>
    %4 = arith.mulf %3, %2 : vector<256x128xf32>
    %5 = vector.broadcast %1 : f32 to vector<256x128xf32>
    %6 = arith.addf %4, %5 : vector<256x128xf32>
    %c0_3 = arith.constant 0 : index
    %c0_4 = arith.constant 0 : index
    %7 = vector.load %arg4[%c0_3, %c0_4] : memref<256x128xf32, #tpu.memory_space<vmem>>, vector<256x128xf32>
    tpu.vector_store %arg4[%c0_3, %c0_4], %6 {strides = array<i32>} : memref<256x128xf32, #tpu.memory_space<vmem>>, vector<256x128xf32>,
    return
  }
  func.func @transform_0(%arg0: i32) -> i32 {
    %c0_i32 = arith.constant 0 : i32
    %c0_i32_0 = arith.constant 0 : i32
    return %c0_i32 : i32
  }
  func.func @transform_1(%arg0: i32) -> i32 {
    %c0_i32 = arith.constant 0 : i32
    %c0_i32_0 = arith.constant 0 : i32
    return %c0_i32 : i32
  }
  func.func @transform_2(%arg0: i32) -> (i32, i32) {
    %c0_i32 = arith.constant 0 : i32
    %c0_i32_0 = arith.constant 0 : i32
    return %arg0, %c0_i32 : i32, i32
  }
  func.func @transform_3(%arg0: i32) -> (i32, i32) {
    %c0_i32 = arith.constant 0 : i32
    %c0_i32_0 = arith.constant 0 : i32
    return %arg0, %c0_i32 : i32, i32
  }
}

</mosaic_0001>

<bundles_post_ra>
// kernel: tpu_custom_call.1
= control target key start
LH: loop header
LB: loop body
LE: loop exit
PB: predicated region body
PF: predicated region fallthrough
CT: control target
= control target key end

     0   :  { %10 = vsyncpa [#allocation5], 0  ;;  %s360_s0 = inlined_call_operand.<no memory space> [shape: f32[1], index: 0, kind: input, shape index: {}]   ;;  %s361_s1 = inlined_call_operand.<no memory space> [shape: f32[1], index: 1, kind: input, shape index: {}]   ;;  %s362_s2 = inlined_call_operand.hbm [shape: f32[256,128], index: 2, kind: input, shape index: {}]   ;;  %s363_s3 = inlined_call_operand.hbm [shape: f32[256,128], index: 3, kind: output, shape index: {}]  }
   0x1   :  { %11 = vsyncpa [#allocation6], 0  ;;  %s232_s12 = smov [#allocation4]   ;;  %s184_s16 = scalar_lea.hbm %s362_s2, 4096 }
   0x2   :  { %s21_s13 = sshll.u32 %s232_s12, 4  ;;  %p185_p0 = scmp.ne.s32.totalorder %s362_s2, %s184_s16  ;;  %s22_s13 = int_to_ptr.vmem [resolvable:$true] %s21_s13 }
   0x3   :  { %p188_p1 = scmp.lt.u32.totalorder %s184_s16, %s362_s2 }
   0x5   :  { %p190_p2 = pnand %p188_p1, %p185_p0 }
   0x7   :  { %193 = shalt.err (!%p190_p2)
}
   0x8   :  { %s194_s21 = scalar_lea.vmem %s22_s13, 4096  ;;  %p199_p4 = scmp.lt.s32.totalorder %s22_s13, %s22_s13 }
   0x9   :  { %p195_p3 = scmp.ne.s32.totalorder %s22_s13, %s194_s21  ;;  %p200_p5 = scmp.lt.s32.totalorder %s194_s21, %s194_s21 }
   0xb   :  { %p201_p6 = por %p200_p5, %p199_p4 }
   0xd   :  { %p202_p7 = pnand %p201_p6, %p195_p3 }
   0xf   :  { %205 = shalt.err (!%p202_p7)
}
  0x10   :  { %s233_s22 = smov 128   ;;  %s234_s23 = smov 8  }
  0x11   :  { %27 = dma.hbm_to_vmem [thread:$0]  %s362_s2, 4096, %s22_s13, [#allocation5], %s233_s22, %s233_s22, %s234_s23  }
  0x12   :  { %228 = dma.done.wait [#allocation5], 4096  }
  0x13   :  { %229 = vsyncadd [#allocation5], 4294963200  ;;  %v274_v0 = vstv %s360_s0  ;;  %v33_v1 = vld [vmem:[#allocation4] sm:$0xff]  ;;  %v279_v2 = vstv %s361_s1  ;;  %v34_v3 = vld [vmem:[#allocation4 + $0x8] sm:$0xff]  ;;  %s235_s0 = smov [#allocation7]  }
  0x14   :  { %v35_v4 = vld [vmem:[#allocation4 + $0x10] sm:$0xff]  ;;  %v66_v5 = vmul.f32 %v274_v0, %v33_v1  ;;  %v67_v6 = vmul.f32 %v274_v0, %v34_v3  ;;  %v36_v8 = vld [vmem:[#allocation4 + $0x18] sm:$0xff]  ;;  %v37_v9 = vld [vmem:[#allocation4 + $0x20] sm:$0xff]  ;;  %s168_s1 = sshll.u32 %s235_s0, 4  ;;  %s169_s1 = int_to_ptr.vmem [resolvable:$true] %s168_s1 }
  0x15   :  { %v68_v7 = vmul.f32 %v274_v0, %v35_v4  ;;  %v38_v10 = vld [vmem:[#allocation4 + $0x28] sm:$0xff]  ;;  %v69_v11 = vmul.f32 %v274_v0, %v36_v8  ;;  %v70_v12 = vmul.f32 %v274_v0, %v37_v9  ;;  %v39_v14 = vld [vmem:[#allocation4 + $0x30] sm:$0xff]  ;;  %v40_v15 = vld [vmem:[#allocation4 + $0x38] sm:$0xff]  ;;  %s206_s2 = scalar_lea.vmem %s169_s1, 4096  ;;  %p211_p9 = scmp.lt.s32.totalorder %s169_s1, %s169_s1 }
  0x16   :  { %v71_v13 = vmul.f32 %v274_v0, %v38_v10  ;;  %v41_v16 = vld [vmem:[#allocation4 + $0x40] sm:$0xff]  ;;  %v99_v17 = vadd.f32 %v279_v2, %v66_v5  ;;  %v100_v18 = vadd.f32 %v279_v2, %v67_v6  ;;  %v72_v20 = vmul.f32 %v274_v0, %v39_v14  ;;  %v42_v21 = vld [vmem:[#allocation4 + $0x48] sm:$0xff]  ;;  %v43_v22 = vld [vmem:[#allocation4 + $0x50] sm:$0xff]  ;;  %p207_p8 = scmp.ne.s32.totalorder %s169_s1, %s206_s2  ;;  %p212_p10 = scmp.lt.s32.totalorder %s206_s2, %s206_s2 }
  0x17   :  { %v101_v19 = vadd.f32 %v279_v2, %v68_v7  ;;  %v44_v23 = vld [vmem:[#allocation4 + $0x58] sm:$0xff]  ;;  %v102_v24 = vadd.f32 %v279_v2, %v69_v11  ;;  %v103_v25 = vadd.f32 %v279_v2, %v70_v12  ;;  %v73_v27 = vmul.f32 %v274_v0, %v40_v15  ;;  %v45_v28 = vld [vmem:[#allocation4 + $0x60] sm:$0xff]  ;;  %v46_v29 = vld [vmem:[#allocation4 + $0x68] sm:$0xff] }
  0x18   :  { %v104_v26 = vadd.f32 %v279_v2, %v71_v13  ;;  %v47_v30 = vld [vmem:[#allocation4 + $0x70] sm:$0xff]  ;;  %131 = vst [vmem:[#allocation7] sm:$0xff] %v99_v17  ;;  %132 = vst [vmem:[#allocation7 + $0x8] sm:$0xff] %v100_v18  ;;  %v105_v31 = vadd.f32 %v279_v2, %v72_v20  ;;  %v74_v32 = vmul.f32 %v274_v0, %v41_v16  ;;  %v48_v35 = vld [vmem:[#allocation4 + $0x78] sm:$0xff]  ;;  %p213_p11 = por %p212_p10, %p211_p9 }
  0x19   :  { %133 = vst [vmem:[#allocation7 + $0x10] sm:$0xff] %v101_v19  ;;  %v75_v33 = vmul.f32 %v274_v0, %v42_v21  ;;  %v76_v34 = vmul.f32 %v274_v0, %v43_v22  ;;  %134 = vst [vmem:[#allocation7 + $0x18] sm:$0xff] %v102_v24  ;;  %v106_v36 = vadd.f32 %v279_v2, %v73_v27  ;;  %v49_v40 = vld [vmem:[#allocation4 + $0x80] sm:$0xff]  ;;  %v50_v41 = vld [vmem:[#allocation4 + $0x88] sm:$0xff] }
  0x1a   :  { %135 = vst [vmem:[#allocation7 + $0x20] sm:$0xff] %v103_v25  ;;  %136 = vst [vmem:[#allocation7 + $0x28] sm:$0xff] %v104_v26  ;;  %v77_v37 = vmul.f32 %v274_v0, %v44_v23  ;;  %v78_v38 = vmul.f32 %v274_v0, %v45_v28  ;;  %v79_v39 = vmul.f32 %v274_v0, %v46_v29  ;;  %v51_v42 = vld [vmem:[#allocation4 + $0x90] sm:$0xff]  ;;  %v52_v47 = vld [vmem:[#allocation4 + $0x98] sm:$0xff]  ;;  %p214_p12 = pnand %p213_p11, %p207_p8 }
  0x1b   :  { %137 = vst [vmem:[#allocation7 + $0x30] sm:$0xff] %v105_v31  ;;  %v107_v43 = vadd.f32 %v279_v2, %v74_v32  ;;  %v108_v44 = vadd.f32 %v279_v2, %v75_v33  ;;  %v109_v45 = vadd.f32 %v279_v2, %v76_v34  ;;  %v80_v46 = vmul.f32 %v274_v0, %v47_v30  ;;  %v53_v48 = vld [vmem:[#allocation4 + $0xa0] sm:$0xff]  ;;  %v54_v49 = vld [vmem:[#allocation4 + $0xa8] sm:$0xff]  ;;  %v55_v54 = vld [vmem:[#allocation4 + $0xb0] sm:$0xff] }
  0x1c   :  { %138 = vst [vmem:[#allocation7 + $0x38] sm:$0xff] %v106_v36  ;;  %v110_v50 = vadd.f32 %v279_v2, %v77_v37  ;;  %v111_v51 = vadd.f32 %v279_v2, %v78_v38  ;;  %v112_v52 = vadd.f32 %v279_v2, %v79_v39  ;;  %v81_v53 = vmul.f32 %v274_v0, %v48_v35  ;;  %v56_v59 = vld [vmem:[#allocation4 + $0xb8] sm:$0xff]  ;;  %v57_v1 = vld [vmem:[#allocation4 + $0xc0] sm:$0xff]  ;;  %v58_v3 = vld [vmem:[#allocation4 + $0xc8] sm:$0xff] }
  0x1d   :  { %139 = vst [vmem:[#allocation7 + $0x40] sm:$0xff] %v107_v43  ;;  %140 = vst [vmem:[#allocation7 + $0x48] sm:$0xff] %v108_v44  ;;  %v113_v55 = vadd.f32 %v279_v2, %v80_v46  ;;  %v82_v56 = vmul.f32 %v274_v0, %v49_v40  ;;  %v83_v57 = vmul.f32 %v274_v0, %v50_v41  ;;  %v59_v4 = vld [vmem:[#allocation4 + $0xd0] sm:$0xff]  ;;  %v60_v9 = vld [vmem:[#allocation4 + $0xd8] sm:$0xff] }
  0x1e   :  { %141 = vst [vmem:[#allocation7 + $0x50] sm:$0xff] %v109_v45  ;;  %v84_v58 = vmul.f32 %v274_v0, %v51_v42  ;;  %142 = vst [vmem:[#allocation7 + $0x58] sm:$0xff] %v110_v50  ;;  %v114_v60 = vadd.f32 %v279_v2, %v81_v53  ;;  %v85_v61 = vmul.f32 %v274_v0, %v52_v47  ;;  %v61_v10 = vld [vmem:[#allocation4 + $0xe0] sm:$0xff]  ;;  %v62_v11 = vld [vmem:[#allocation4 + $0xe8] sm:$0xff] }
  0x1f   :  { %143 = vst [vmem:[#allocation7 + $0x60] sm:$0xff] %v111_v51  ;;  %144 = vst [vmem:[#allocation7 + $0x68] sm:$0xff] %v112_v52  ;;  %v86_v62 = vmul.f32 %v274_v0, %v53_v48  ;;  %v87_v63 = vmul.f32 %v274_v0, %v54_v49  ;;  %v115_v5 = vadd.f32 %v279_v2, %v82_v56  ;;  %v63_v16 = vld [vmem:[#allocation4 + $0xf0] sm:$0xff]  ;;  %v64_v21 = vld [vmem:[#allocation4 + $0xf8] sm:$0xff] }
  0x20   :  { %145 = vst [vmem:[#allocation7 + $0x70] sm:$0xff] %v113_v55  ;;  %v116_v6 = vadd.f32 %v279_v2, %v83_v57  ;;  %v117_v7 = vadd.f32 %v279_v2, %v84_v58  ;;  %v88_v8 = vmul.f32 %v274_v0, %v55_v54  ;;  %146 = vst [vmem:[#allocation7 + $0x78] sm:$0xff] %v114_v60 }
  0x21   :  { %v118_v12 = vadd.f32 %v279_v2, %v85_v61  ;;  %v119_v13 = vadd.f32 %v279_v2, %v86_v62  ;;  %v120_v14 = vadd.f32 %v279_v2, %v87_v63  ;;  %v89_v15 = vmul.f32 %v274_v0, %v56_v59  ;;  %147 = vst [vmem:[#allocation7 + $0x80] sm:$0xff] %v115_v5 }
  0x22   :  { %148 = vst [vmem:[#allocation7 + $0x88] sm:$0xff] %v116_v6  ;;  %149 = vst [vmem:[#allocation7 + $0x90] sm:$0xff] %v117_v7  ;;  %v121_v17 = vadd.f32 %v279_v2, %v88_v8  ;;  %v90_v18 = vmul.f32 %v274_v0, %v57_v1  ;;  %v91_v19 = vmul.f32 %v274_v0, %v58_v3 }
  0x23   :  { %v92_v20 = vmul.f32 %v274_v0, %v59_v4  ;;  %150 = vst [vmem:[#allocation7 + $0x98] sm:$0xff] %v118_v12  ;;  %151 = vst [vmem:[#allocation7 + $0xa0] sm:$0xff] %v119_v13  ;;  %v122_v22 = vadd.f32 %v279_v2, %v89_v15  ;;  %v93_v23 = vmul.f32 %v274_v0, %v60_v9 }
  0x24   :  { %152 = vst [vmem:[#allocation7 + $0xa8] sm:$0xff] %v120_v14  ;;  %v94_v24 = vmul.f32 %v274_v0, %v61_v10  ;;  %v95_v25 = vmul.f32 %v274_v0, %v62_v11  ;;  %153 = vst [vmem:[#allocation7 + $0xb0] sm:$0xff] %v121_v17  ;;  %v123_v26 = vadd.f32 %v279_v2, %v90_v18 }
  0x25   :  { %v124_v27 = vadd.f32 %v279_v2, %v91_v19  ;;  %v125_v28 = vadd.f32 %v279_v2, %v92_v20  ;;  %v96_v29 = vmul.f32 %v274_v0, %v63_v16  ;;  %154 = vst [vmem:[#allocation7 + $0xb8] sm:$0xff] %v122_v22  ;;  %v126_v30 = vadd.f32 %v279_v2, %v93_v23 }
  0x26   :  { %v127_v31 = vadd.f32 %v279_v2, %v94_v24  ;;  %v128_v32 = vadd.f32 %v279_v2, %v95_v25  ;;  %v97_v33 = vmul.f32 %v274_v0, %v64_v21  ;;  %155 = vst [vmem:[#allocation7 + $0xc0] sm:$0xff] %v123_v26 }
  0x27   :  { %156 = vst [vmem:[#allocation7 + $0xc8] sm:$0xff] %v124_v27  ;;  %157 = vst [vmem:[#allocation7 + $0xd0] sm:$0xff] %v125_v28  ;;  %v129_v34 = vadd.f32 %v279_v2, %v96_v29 }
  0x28   :  { %158 = vst [vmem:[#allocation7 + $0xd8] sm:$0xff] %v126_v30  ;;  %159 = vst [vmem:[#allocation7 + $0xe0] sm:$0xff] %v127_v31  ;;  %v130_v35 = vadd.f32 %v279_v2, %v97_v33 }
  0x29   :  { %160 = vst [vmem:[#allocation7 + $0xe8] sm:$0xff] %v128_v32  ;;  %161 = vst [vmem:[#allocation7 + $0xf0] sm:$0xff] %v129_v34 }
  0x2a   :  { %162 = vst [vmem:[#allocation7 + $0xf8] sm:$0xff] %v130_v35 }
  0x2b   :  { %217 = shalt.err (!%p214_p12)
}
  0x2c   :  { %s218_s5 = scalar_lea.hbm %s363_s3, 4096 }
  0x2d   :  { %p219_p13 = scmp.ne.s32.totalorder %s363_s3, %s218_s5  ;;  %p222_p0 = scmp.lt.u32.totalorder %s218_s5, %s363_s3 }
  0x2f   :  { %p224_p1 = pnand %p222_p0, %p219_p13 }
  0x31   :  { %227 = shalt.err (!%p224_p1)
}
  0x32   :  { %174 = dma.vmem_to_hbm [thread:$0]  %s169_s1, 4096, %s363_s3, [#allocation6], %s233_s22, %s233_s22, %s234_s23  }
  0x33   :  { %230 = dma.done.wait [#allocation6], 4096  }
  0x34   :  { %231 = vsyncadd [#allocation6], 4294963200 }
  0x35   :  { %178 = vsyncpa [#allocation5], 1 }
  0x36   :  { %179 = vsyncpa [#allocation6], 1 }

</bundles_post_ra>
